<compile_context>
chip_gen: v5e
topology: v5e:2x2
jax: 0.10.0
libtpu: 0.0.40
codegen_flags: <defaults>
</compile_context>

<pallas_src>
import functools

import jax
import jax.numpy as jnp
from jax.experimental import pallas as pl
from jax.experimental.pallas import tpu as pltpu


def _round_up(x, m):
    return ((x + m - 1) // m) * m


def _choose_tiles(n):
    # Tiles sized so the pass-B working set (double-buffered int8 adj tile,
    # resident bf16 Wh, a few (TM, TN) f32 element-wise temporaries) stays well
    # under every generation's VMEM budget, including v7x's 64 MiB physical.
    if n >= 1024:
        return 256, 1024
    if n >= 512:
        return 256, 512
    if n >= 256:
        return 256, 256
    return 128, 128


def _vmem_budget(np_, hf, feat, tm, tn, heads, wh_resident):
    """Rough pass-B VMEM footprint (bytes), rounded up to layout granularity."""
    lane = 128
    wh_rows = np_ if wh_resident else tn
    b = 2 * tm * tn                                   # adj int8, double-buffered
    b += 2 * wh_rows * max(hf, lane) * 2              # Wh (bf16)
    b += 2 * max(heads, 8) * np_ * 4                  # f2 (lane-major, resident)
    b += 2 * tm * lane * 4                            # f1 tile
    b += 2 * tm * max(hf, lane) * 4                   # out tile
    b += heads * tm * (2 * lane + max(feat, lane)) * 4  # m / l / acc scratch
    b += 6 * tm * tn * 4                              # in-kernel (TM,TN) f32 temps
    b = int(b * 1.25) + (1 << 20)
    # Never below the usual scoped default, never above what v5e/v6e can give.
    return min(max(b, 32 * 1024 * 1024), 100 * 1024 * 1024)


# ----------------------------------------------------------------------------
# Pass A: Wh_all = h @ W_all (all heads in ONE bf16 matmul, heads on the lane
# axis), plus the per-node attention projections f1 / f2 fused in the epilogue.
# ----------------------------------------------------------------------------
def _wh_kernel(h_ref, w_ref, a1_ref, a2_ref, wh_ref, f1_ref, f2_ref):
    # (TM, F) bf16 @ (F, H*F) bf16 -> (TM, H*F) f32
    wh = jnp.dot(h_ref[...], w_ref[...], preferred_element_type=jnp.float32)
    wh_ref[...] = wh.astype(jnp.bfloat16)
    # f1[n, h] = Wh_h[n] . a1_h ;  f2[n, h] = Wh_h[n] . a2_h   (block-diag A1/A2)
    # Kept in f32 (from the f32 accumulator) for logit accuracy.
    f1_ref[...] = jnp.dot(wh, a1_ref[...], preferred_element_type=jnp.float32)
    f2_ref[...] = jnp.dot(wh, a2_ref[...], preferred_element_type=jnp.float32)


# ----------------------------------------------------------------------------
# Pass B: tiled, online-softmax (flash-attention style) GAT attention.
#   grid = (row_tiles, col_tiles); col axis is the softmax reduction axis.
#   Heads are a static Python loop in the body -> adj tile fetched once.
# ----------------------------------------------------------------------------
def _attn_kernel(wh_ref, f1_ref, f2_ref, adj_ref, out_ref,
                 m_sc, l_sc, acc_sc, *, alpha, heads, feat, concat, final,
                 wh_resident):
    j = pl.program_id(1)
    tn = adj_ref.shape[1]

    @pl.when(j == 0)
    def _():
        m_sc[...] = jnp.full_like(m_sc, -jnp.inf)
        l_sc[...] = jnp.zeros_like(l_sc)
        acc_sc[...] = jnp.zeros_like(acc_sc)

    adj_tile = adj_ref[...] > 0                      # (TM, TN) mask, shared by heads
    neg_big = jnp.float32(-9.0e15)
    col0 = pl.multiple_of(j * tn, tn)
    wh_col0 = col0 if wh_resident else 0             # resident Wh is sliced per tile

    for h in range(heads):                           # static unroll over heads
        f1 = f1_ref[:, pl.ds(h, 1)]                  # (TM, 1)  f32
        f2 = f2_ref[pl.ds(h, 1), pl.ds(col0, tn)]    # (1,  TN) f32 (lane-major)

        # e[i, j] = leakyrelu(Wh[i].a1 + Wh[j].a2), masked by adjacency.
        e = f1 + f2                                                  # (TM, TN)
        e = jnp.where(e > 0, e, alpha * e)                           # LeakyReLU
        s = jnp.where(adj_tile, e, neg_big)                          # adj mask

        # Online softmax update (per-head scratch).
        m_prev = m_sc[h]                                             # (TM, 1)
        m_new = jnp.maximum(m_prev, jnp.max(s, axis=1, keepdims=True))
        scale = jnp.exp(m_prev - m_new)
        p = jnp.exp(s - m_new)                                       # (TM, TN) f32
        l_sc[h] = scale * l_sc[h] + jnp.sum(p, axis=1, keepdims=True)
        # att @ Wh with bf16 MXU inputs, f32 accumulation.
        wh_j = wh_ref[pl.ds(wh_col0, tn), pl.ds(h * feat, feat)]     # (TN, F) bf16
        acc_sc[h] = scale * acc_sc[h] + jnp.dot(
            p.astype(jnp.bfloat16), wh_j, preferred_element_type=jnp.float32)
        m_sc[h] = m_new
        # F.dropout(attention, p, training=False) -> identity (eval mode).

    @pl.when(j == pl.num_programs(1) - 1)
    def _():
        # Exact (non-approx) normalization: runs once per row tile and feeds the
        # final-layer log_softmax, so keep it full precision.
        if final:
            # Output layer: heads == 1, lane dim == nclass (no lane padding).
            out = acc_sc[0] * (1.0 / l_sc[0])
            # GAT.forward tail: elu(out_att(x)) then log_softmax(dim=1).
            out = jnp.where(out > 0.0, out, jnp.exp(out) - 1.0)
            row_max = jnp.max(out, axis=1, keepdims=True)
            shifted = out - row_max
            out = shifted - jnp.log(jnp.sum(jnp.exp(shifted), axis=1,
                                            keepdims=True))
            out_ref[...] = out.astype(out_ref.dtype)
        else:
            pieces = []
            for h in range(heads):
                o = acc_sc[h] * (1.0 / l_sc[h])
                if concat:
                    # ELU (per-head output of the hidden layer).
                    o = jnp.where(o > 0.0, o, jnp.exp(o) - 1.0)
                pieces.append(o)
            out = pieces[0] if heads == 1 else jnp.concatenate(pieces, axis=1)
            out_ref[...] = out.astype(out_ref.dtype)   # lane-dense (TM, H*F) store


# ----------------------------------------------------------------------------
# Fused multi-head GraphAttentionLayer forward.
# ----------------------------------------------------------------------------
def gat_multihead_layer(h, W, a, adjp, n_valid, *, alpha, concat, final=False,
                        tm, tn):
    """h: (N, F), W: (H, F, F), a: (H, 2F), adjp: (Np, Np) int8 (padded, shared).
       Returns (N, H*F) f32 with head h's features in columns [h*F, (h+1)*F)
       (i.e. torch.cat([...], dim=1) layout)."""
    N, F = h.shape
    H = W.shape[0]
    HF = H * F
    Np = adjp.shape[0]
    assert W.shape == (H, F, F)
    assert a.shape == (H, 2 * F)
    assert Np % tm == 0 and Np % tn == 0
    if final:
        assert H == 1, "final log_softmax epilogue assumes a single output head"
        assert not concat

    hp = jnp.zeros((Np, F), jnp.bfloat16).at[:N].set(h.astype(jnp.bfloat16))
    # W_all[:, h*F:(h+1)*F] = W[h]  ->  h @ W_all = [Wh_0 | Wh_1 | ... ] (bf16 MXU)
    W_all = jnp.transpose(W.astype(jnp.bfloat16), (1, 0, 2)).reshape(F, HF)
    # Block-diagonal attention projections: A1[h*F+f, g] = a1[h, f] * (h == g).
    a1 = a[:, :F].astype(jnp.float32)                  # (H, F)
    a2 = a[:, F:].astype(jnp.float32)                  # (H, F)
    eye = jnp.eye(H, dtype=jnp.float32)
    A1 = (a1[:, :, None] * eye[:, None, :]).reshape(HF, H)
    A2 = (a2[:, :, None] * eye[:, None, :]).reshape(HF, H)

    # ---- pass A: Wh_all = h @ W_all, plus f1 / f2 -------------------------
    wh, f1, f2 = pl.pallas_call(
        _wh_kernel,
        out_shape=(jax.ShapeDtypeStruct((Np, HF), jnp.bfloat16),
                   jax.ShapeDtypeStruct((Np, H), jnp.float32),
                   jax.ShapeDtypeStruct((Np, H), jnp.float32)),
        grid=(Np // tm,),
        in_specs=[
            pl.BlockSpec((tm, F), lambda i: (i, 0)),        # h rows (bf16)
            pl.BlockSpec((F, HF), lambda i: (0, 0)),        # W_all (bf16, resident)
            pl.BlockSpec((HF, H), lambda i: (0, 0)),        # A1
            pl.BlockSpec((HF, H), lambda i: (0, 0)),        # A2
        ],
        out_specs=(pl.BlockSpec((tm, HF), lambda i: (i, 0)),
                   pl.BlockSpec((tm, H), lambda i: (i, 0)),
                   pl.BlockSpec((tm, H), lambda i: (i, 0))),
        compiler_params=pltpu.CompilerParams(
            dimension_semantics=("parallel",)),
    )(hp, W_all, A1, A2)

    # Tiny XLA transpose so pass B reads f2 lane-major (no in-kernel transpose).
    f2_lane = f2.T                                       # (H, Np) f32

    # Keep the full bf16 Wh value matrix resident in VMEM when it is cheap;
    # otherwise stream it per column tile.
    wh_resident = Np * HF * 2 <= 8 * 1024 * 1024
    if wh_resident:
        wh_spec = pl.BlockSpec((Np, HF), lambda i, j: (0, 0))
    else:
        wh_spec = pl.BlockSpec((tn, HF), lambda i, j: (j, 0))

    # ---- pass B: tiled masked softmax + att @ Wh (heads fused in body) -----
    kernel = functools.partial(_attn_kernel, alpha=alpha, heads=H, feat=F,
                               concat=concat, final=final,
                               wh_resident=wh_resident)
    out = pl.pallas_call(
        kernel,
        out_shape=jax.ShapeDtypeStruct((Np, HF), jnp.float32),
        grid=(Np // tm, Np // tn),
        in_specs=[
            wh_spec,                                         # Wh (bf16 values)
            pl.BlockSpec((tm, H), lambda i, j: (i, 0)),      # f1 (rows)
            pl.BlockSpec((H, Np), lambda i, j: (0, 0)),      # f2 (lane-major, resident)
            pl.BlockSpec((tm, tn), lambda i, j: (i, j)),     # adj tile (int8) - once!
        ],
        out_specs=pl.BlockSpec((tm, HF), lambda i, j: (i, 0)),
        scratch_shapes=[
            pltpu.VMEM((H, tm, 1), jnp.float32),     # running max  m (per head)
            pltpu.VMEM((H, tm, 1), jnp.float32),     # running sum  l (per head)
            pltpu.VMEM((H, tm, F), jnp.float32),     # running acc  att @ Wh
        ],
        compiler_params=pltpu.CompilerParams(
            dimension_semantics=("parallel", "arbitrary"),
            vmem_limit_bytes=_vmem_budget(Np, HF, F, tm, tn, H, wh_resident)),
    )(wh, f1, f2_lane, adjp)

    return out[:n_valid]


# ----------------------------------------------------------------------------
# GAT forward.  Heads are fused into a single layer call; the (N, H*F) output
# layout already IS torch.cat([head_0, ..., head_{H-1}], dim=1).
# ----------------------------------------------------------------------------
def gat_forward(x, adj, params, *, alpha):
    # F.dropout(x, p, training=False) -> identity (eval mode).
    N = x.shape[0]
    tm, tn = _choose_tiles(N)
    Np = _round_up(N, max(tm, tn))
    # Padded int8 edge mask computed ONCE and reused by both layers (4x less HBM
    # traffic than f32, and no per-layer N^2 conversion pass).
    # NOTE: rows with zero neighbors (no self-loop) get ~uniform attention over
    # the padded columns, matching the reference's -9e15 masking up to padding
    # dilution; the demo graph always has self-loops.
    adjp = jnp.zeros((Np, Np), jnp.int8).at[:N, :N].set((adj > 0).astype(jnp.int8))

    W_h = jnp.stack([W for (W, _) in params["heads"]])   # (H, nhid, nhid)
    a_h = jnp.stack([a for (_, a) in params["heads"]])   # (H, 2*nhid)
    x1 = gat_multihead_layer(x, W_h, a_h, adjp, N, alpha=alpha, concat=True,
                             tm=tm, tn=tn)               # (N, H*nhid)
    # F.dropout(x, p, training=False) -> identity.
    W_out, a_out = params["out"]
    out = gat_multihead_layer(x1, W_out[None], a_out[None], adjp, N, alpha=alpha,
                              concat=False, final=True, tm=tm, tn=tn)  # (N, nclass)
    return out


# ----------------------------------------------------------------------------
# Pure-JAX reference (numerical sanity check only).
# ----------------------------------------------------------------------------
def _layer_ref(h, W, a, adj, alpha, concat):
    F = W.shape[0]
    Wh = h @ W
    e = (Wh @ a[:F])[:, None] + (Wh @ a[F:])[None, :]
    e = jnp.where(e > 0, e, alpha * e)
    att = jnp.where(adj > 0, e, -9.0e15)
    att = jax.nn.softmax(att, axis=1)
    hp = att @ Wh
    return jax.nn.elu(hp) if concat else hp


def _gat_ref(x, adj, params, alpha):
    heads = [_layer_ref(x, W, a, adj, alpha, True) for (W, a) in params["heads"]]
    x = jnp.concatenate(heads, axis=1)
    W_out, a_out = params["out"]
    x = jax.nn.elu(_layer_ref(x, W_out, a_out, adj, alpha, False))
    return jax.nn.log_softmax(x, axis=1)


# ----------------------------------------------------------------------------
# Deterministic parameter init (xavier_uniform with gain=1.414).
# ----------------------------------------------------------------------------
def _xavier_uniform(key, shape, gain=1.414):
    fan_in, fan_out = shape[0], shape[1]
    limit = gain * (6.0 / (fan_in + fan_out)) ** 0.5
    return jax.random.uniform(key, shape, jnp.float32, -limit, limit)


def init_gat_params(key, nhid, nclass, nheads):
    params = {"heads": [], "out": None}
    for _ in range(nheads):
        key, k1, k2 = jax.random.split(key, 3)
        W = _xavier_uniform(k1, (nhid, nhid))                # (out_f, out_f)
        a = _xavier_uniform(k2, (2 * nhid, 1)).reshape(-1)   # (2*out_f,)
        params["heads"].append((W, a))
    key, k1, k2 = jax.random.split(key, 3)
    W_out = _xavier_uniform(k1, (nclass, nclass))
    a_out = _xavier_uniform(k2, (2 * nclass, 1)).reshape(-1)
    params["out"] = (W_out, a_out)
    return params


if __name__ == "__main__":
    # Small shapes consistent with the (as-written) module:
    #   x: (N, nhid), per-head W: (nhid, nhid), out W: (nclass, nclass),
    #   with nclass == nhid * nheads so the output layer's mm typechecks.
    N, nhid, nheads = 12, 8, 4
    nclass = nhid * nheads          # 32
    alpha = 0.2
    dropout = 0.5                   # no-op in eval mode

    key = jax.random.PRNGKey(0)
    kx, kadj, kp = jax.random.split(key, 3)

    x = jax.random.normal(kx, (N, nhid), jnp.float32)
    adj = (jax.random.uniform(kadj, (N, N)) > 0.5).astype(jnp.float32)
    adj = jnp.maximum(adj, jnp.eye(N, dtype=jnp.float32))   # self-loops

    params = init_gat_params(kp, nhid, nclass, nheads)

    out = jax.block_until_ready(gat_forward(x, adj, params, alpha=alpha))

    ref = _gat_ref(x, adj, params, alpha)
    assert out.shape == (N, nclass)
    # bf16 MXU inputs -> compare with relaxed tolerances.
    rel = jnp.linalg.norm(out - ref) / jnp.linalg.norm(ref)
    assert rel < 5e-2, f"relative error too large: {rel}"
    assert jnp.allclose(out, ref, atol=1.5e-1, rtol=1e-1), "mismatch vs reference"

    print("KERNEL_OK")
</pallas_src>

<mosaic_0001>
module attributes {stable_mosaic.version = 11 : i64} {
  func.func @_wh_kernel(%arg0: i32, %arg1: memref<128x8xbf16, #tpu.memory_space<vmem>>, %arg2: memref<8x32xbf16, #tpu.memory_space<vmem>>, %arg3: memref<32x4xf32, #tpu.memory_space<vmem>>, %arg4: memref<32x4xf32, #tpu.memory_space<vmem>>, %arg5: memref<128x32xbf16, #tpu.memory_space<vmem>>, %arg6: memref<128x4xf32, #tpu.memory_space<vmem>>, %arg7: memref<128x4xf32, #tpu.memory_space<vmem>>) attributes {dimension_semantics = [#tpu.dimension_semantics<parallel>], iteration_bounds = array<i64: 1>, scalar_prefetch = 0 : i64, scratch_operands = 0 : i64, tpu.core_type = #tpu.core_type<tc>, window_params = [{transform_indices = @transform_0, window_bounds = array<i64: 128, 8>}, {pipeline_mode = #tpu.pipeline_mode<synchronous>, transform_indices = @transform_1, window_bounds = array<i64: 8, 32>}, {pipeline_mode = #tpu.pipeline_mode<synchronous>, transform_indices = @transform_2, window_bounds = array<i64: 32, 4>}, {pipeline_mode = #tpu.pipeline_mode<synchronous>, transform_indices = @transform_3, window_bounds = array<i64: 32, 4>}, {transform_indices = @transform_4, window_bounds = array<i64: 128, 32>}, {transform_indices = @transform_5, window_bounds = array<i64: 128, 4>}, {transform_indices = @transform_6, window_bounds = array<i64: 128, 4>}]} {
    %c0 = arith.constant 0 : index
    %c0_0 = arith.constant 0 : index
    %0 = vector.load %arg1[%c0, %c0_0] : memref<128x8xbf16, #tpu.memory_space<vmem>>, vector<128x8xbf16>
    %c0_1 = arith.constant 0 : index
    %c0_2 = arith.constant 0 : index
    %1 = vector.load %arg2[%c0_1, %c0_2] : memref<8x32xbf16, #tpu.memory_space<vmem>>, vector<8x32xbf16>
    %cst = arith.constant dense<0.000000e+00> : vector<128x32xf32>
    %2 = tpu.matmul %0, %1, %cst {dimension_numbers = #tpu.dot_dimension_numbers<[1], [0], [0], [1], [0, 0, 1, 1], [], []>} : vector<128x8xbf16>, vector<8x32xbf16>, vector<128x32xf32> -> vector<128x32xf32>
    %3 = arith.truncf %2 : vector<128x32xf32> to vector<128x32xbf16>
    %c0_3 = arith.constant 0 : index
    %c0_4 = arith.constant 0 : index
    %4 = vector.load %arg5[%c0_3, %c0_4] : memref<128x32xbf16, #tpu.memory_space<vmem>>, vector<128x32xbf16>
    tpu.vector_store %arg5[%c0_3, %c0_4], %3 {strides = array<i32>} : memref<128x32xbf16, #tpu.memory_space<vmem>>, vector<128x32xbf16>,
    %c0_5 = arith.constant 0 : index
    %c0_6 = arith.constant 0 : index
    %5 = vector.load %arg3[%c0_5, %c0_6] : memref<32x4xf32, #tpu.memory_space<vmem>>, vector<32x4xf32>
    %cst_7 = arith.constant dense<0.000000e+00> : vector<128x4xf32>
    %6 = tpu.matmul %2, %5, %cst_7 {dimension_numbers = #tpu.dot_dimension_numbers<[1], [0], [0], [1], [0, 0, 1, 1], [], []>} : vector<128x32xf32>, vector<32x4xf32>, vector<128x4xf32> -> vector<128x4xf32>
    %c0_8 = arith.constant 0 : index
    %c0_9 = arith.constant 0 : index
    %7 = vector.load %arg6[%c0_8, %c0_9] : memref<128x4xf32, #tpu.memory_space<vmem>>, vector<128x4xf32>
    tpu.vector_store %arg6[%c0_8, %c0_9], %6 {strides = array<i32>} : memref<128x4xf32, #tpu.memory_space<vmem>>, vector<128x4xf32>,
    %c0_10 = arith.constant 0 : index
    %c0_11 = arith.constant 0 : index
    %8 = vector.load %arg4[%c0_10, %c0_11] : memref<32x4xf32, #tpu.memory_space<vmem>>, vector<32x4xf32>
    %cst_12 = arith.constant dense<0.000000e+00> : vector<128x4xf32>
    %9 = tpu.matmul %2, %8, %cst_12 {dimension_numbers = #tpu.dot_dimension_numbers<[1], [0], [0], [1], [0, 0, 1, 1], [], []>} : vector<128x32xf32>, vector<32x4xf32>, vector<128x4xf32> -> vector<128x4xf32>
    %c0_13 = arith.constant 0 : index
    %c0_14 = arith.constant 0 : index
    %10 = vector.load %arg7[%c0_13, %c0_14] : memref<128x4xf32, #tpu.memory_space<vmem>>, vector<128x4xf32>
    tpu.vector_store %arg7[%c0_13, %c0_14], %9 {strides = array<i32>} : memref<128x4xf32, #tpu.memory_space<vmem>>, vector<128x4xf32>,
    return
  }
  func.func @transform_0(%arg0: i32) -> (i32, i32) {
    %c0_i32 = arith.constant 0 : i32
    %c0_i32_0 = arith.constant 0 : i32
    return %arg0, %c0_i32 : i32, i32
  }
  func.func @transform_1(%arg0: i32) -> (i32, i32) {
    %c0_i32 = arith.constant 0 : i32
    %c0_i32_0 = arith.constant 0 : i32
    %c0_i32_1 = arith.constant 0 : i32
    return %c0_i32, %c0_i32_0 : i32, i32
  }
  func.func @transform_2(%arg0: i32) -> (i32, i32) {
    %c0_i32 = arith.constant 0 : i32
    %c0_i32_0 = arith.constant 0 : i32
    %c0_i32_1 = arith.constant 0 : i32
    return %c0_i32, %c0_i32_0 : i32, i32
  }
  func.func @transform_3(%arg0: i32) -> (i32, i32) {
    %c0_i32 = arith.constant 0 : i32
    %c0_i32_0 = arith.constant 0 : i32
    %c0_i32_1 = arith.constant 0 : i32
    return %c0_i32, %c0_i32_0 : i32, i32
  }
  func.func @transform_4(%arg0: i32) -> (i32, i32) {
    %c0_i32 = arith.constant 0 : i32
    %c0_i32_0 = arith.constant 0 : i32
    return %arg0, %c0_i32 : i32, i32
  }
  func.func @transform_5(%arg0: i32) -> (i32, i32) {
    %c0_i32 = arith.constant 0 : i32
    %c0_i32_0 = arith.constant 0 : i32
    return %arg0, %c0_i32 : i32, i32
  }
  func.func @transform_6(%arg0: i32) -> (i32, i32) {
    %c0_i32 = arith.constant 0 : i32
    %c0_i32_0 = arith.constant 0 : i32
    return %arg0, %c0_i32 : i32, i32
  }
}

</mosaic_0001>

<bundles_post_ra>
// kernel: tpu_custom_call.1
= control target key start
LH: loop header
LB: loop body
LE: loop exit
PB: predicated region body
PF: predicated region fallthrough
CT: control target
= control target key end

     0   :  { %vm103_vm0 = vcmask 1043456   ;;  %vm78_vm1 = vcmask 64512   ;;  %vm193_vm2 = vcmask 261120   ;;  %vm172_vm3 = vcmask 257024   ;;  %s828_s1 = inlined_call_operand.vmem [shape: bf16[8,32], index: 1, kind: input, shape index: {}]   ;;  %s829_s0 = inlined_call_operand.vmem [shape: bf16[128,8], index: 0, kind: input, shape index: {}]   ;;  %s830_s2 = inlined_call_operand.vmem [shape: f32[32,4], index: 2, kind: input, shape index: {}]   ;;  %s831_s3 = inlined_call_operand.vmem [shape: f32[32,4], index: 3, kind: input, shape index: {}]   ;;  %s832_s4 = inlined_call_operand.vmem [shape: bf16[128,32], index: 4, kind: output, shape index: {0}]   ;;  %s833_s5 = inlined_call_operand.vmem [shape: f32[128,4], index: 5, kind: output, shape index: {1}]   ;;  %s834_s6 = inlined_call_operand.vmem [shape: f32[128,4], index: 6, kind: output, shape index: {2}]  }
   0x1   :  { %v37_v0 = vld [vmem:[%s828_s1] sm:$0xf]  ;;  %v494_v3 = vld [vmem:[%s829_s0 + $0x8] sm:$0xff]  ;;  %v495_v4 = vld [vmem:[%s829_s0 + $0x10] sm:$0xff]  ;;  %vm307_vm4 = vcmask 31744  }
   0x2   :  { %v105_v1 = vsel %vm103_vm0, %v37_v0, 0  ;;  %v493_v2 = vld [vmem:[%s829_s0] sm:$0xff]  ;;  %v496_v5 = vld [vmem:[%s829_s0 + $0x18] sm:$0xff]  ;;  %v191_v10 = vld [vmem:[%s830_s2 + $0x10] sm:$0xff] }
   0x3   :  { %114 = vmatpush.bf16.msra.mxu0 %v105_v1  ;;  %501 = vmatpush.bf16.msra.mxu3 %v105_v1  ;;  %v497_v6 = vld [vmem:[%s829_s0 + $0x20] sm:$0xff]  ;;  %v500_v7 = vld [vmem:[%s829_s0 + $0x38] sm:$0xff]  ;;  %v326_v11 = vld [vmem:[%s831_s3 + $0x10] sm:$0xff] }
   0x4   :  { %v192_v8 = vld [vmem:[%s830_s2 + $0x18] sm:$0xff]  ;;  %v190_v12 = vld [vmem:[%s830_s2 + $0x8] sm:$0xff]  ;;  %v499_v15 = vld [vmem:[%s829_s0 + $0x30] sm:$0xff] }
   0x5   :  { %v327_v9 = vld [vmem:[%s831_s3 + $0x18] sm:$0xff]  ;;  %254 = vmatpush.msra.mxu1 %v192_v8  ;;  %v325_v13 = vld [vmem:[%s831_s3 + $0x8] sm:$0xff]  ;;  %v189_v16 = vld [vmem:[%s830_s2] sm:$0xff] }
   0x6   :  { %453 = vmatmul.msk.bf16.vlgmr.msra.gmra.mxu0 %vm78_vm1, %v493_v2  ;;  %340 = vmatpush.msra.mxu2 %v327_v9  ;;  %v498_v14 = vld [vmem:[%s829_s0 + $0x28] sm:$0xff]  ;;  %v324_v17 = vld [vmem:[%s831_s3] sm:$0xff] }
   0x7   :  { %460 = vmatmul.msk.bf16.vlgmr.msra.gmra.mxu3 %vm78_vm1, %v500_v7  ;;  %255 = vmatpush.msra.mxu1 %v191_v10 }
   0x8   :  { %341 = vmatpush.msra.mxu2 %v326_v11  ;;  %502 = vmatpush.msrb.mxu3 %v192_v8 }
   0x9   :  { %256 = vmatpush.msra.mxu1 %v190_v12 }
   0xa   :  { %342 = vmatpush.msra.mxu2 %v325_v13  ;;  %503 = vmatpush.msrb.mxu3 %v191_v10 }
   0xb   :  { %257 = vmatpush.msra.mxu1 %v189_v16 }
   0xc   :  { %504 = vmatpush.msrb.mxu3 %v190_v12  ;;  %343 = vmatpush.msra.mxu2 %v324_v17 }
   0xe   :  { %505 = vmatpush.msrb.mxu3 %v189_v16 }
  0x10   :  { %506 = vmatpush.msra.mxu3 %v327_v9 }
  0x12   :  { %507 = vmatpush.msra.mxu3 %v326_v11 }
  0x14   :  { %508 = vmatpush.msra.mxu3 %v325_v13 }
  0x16   :  { %454 = vmatmul.msk.bf16.gmra.mxu0 %vm78_vm1, %v494_v3  ;;  %509 = vmatpush.msra.mxu3 %v324_v17 }
  0x26   :  { %455 = vmatmul.msk.bf16.gmra.mxu0 %vm78_vm1, %v495_v4 }
  0x36   :  { %456 = vmatmul.msk.bf16.gmra.mxu0 %vm78_vm1, %v496_v5 }
  0x46   :  { %457 = vmatmul.msk.bf16.gmra.mxu0 %vm78_vm1, %v497_v6 }
  0x56   :  { %458 = vmatmul.msk.bf16.gmra.mxu0 %vm78_vm1, %v498_v14 }
  0x66   :  { %459 = vmatmul.msk.bf16.gmra.mxu0 %vm78_vm1, %v499_v15 }
  0x83   :  { %v116_v18 = vpop.f32.mrf.mxu0 }
  0x84   :  { %v156_v19 = vpack.c.bf16 %v116_v18, %v116_v18  ;;  %461 = vmatmul.msk.f32.vlgmr.msra.gmra.mxu1 %vm193_vm2, %v116_v18  ;;  %477 = vmatmul.msk.f32.vlgmr.msra.gmra.mxu2 %vm193_vm2, %v116_v18 }
  0x86   :  { %173 = vst.msk [vmem:[%s832_s4] sm:$0xf] %vm172_vm3, %v156_v19 }
  0x8a   :  { %v151_v37 = vpop.f32.mrf.mxu3 }
  0x8b   :  { %v118_v20 = vpop.f32.mrf.mxu0  ;;  %v170_v39 = vpack.c.bf16 %v151_v37, %v151_v37 }
  0x8c   :  { %v157_v21 = vpack.c.bf16 %v118_v20, %v118_v20  ;;  %462 = vmatmul.msk.f32.gmra.mxu1 %vm193_vm2, %v118_v20  ;;  %478 = vmatmul.msk.f32.gmra.mxu2 %vm193_vm2, %v118_v20 }
  0x8d   :  { %187 = vst.msk [vmem:[%s832_s4 + $0x38] sm:$0xf] %vm172_vm3, %v170_v39 }
  0x8e   :  { %174 = vst.msk [vmem:[%s832_s4 + $0x4] sm:$0xf] %vm172_vm3, %v157_v21 }
  0x92   :  { %v153_v41 = vpop.f32.mrf.mxu3 }
  0x93   :  { %v121_v22 = vpop.f32.mrf.mxu0  ;;  %v171_v43 = vpack.c.bf16 %v153_v41, %v153_v41 }
  0x94   :  { %v158_v23 = vpack.c.bf16 %v121_v22, %v121_v22  ;;  %463 = vmatmul.msk.f32.gmra.mxu1 %vm193_vm2, %v121_v22  ;;  %479 = vmatmul.msk.f32.gmra.mxu2 %vm193_vm2, %v121_v22 }
  0x95   :  { %188 = vst.msk [vmem:[%s832_s4 + $0x3c] sm:$0xf] %vm172_vm3, %v171_v43 }
  0x96   :  { %175 = vst.msk [vmem:[%s832_s4 + $0x8] sm:$0xf] %vm172_vm3, %v158_v23 }
  0x9b   :  { %v123_v24 = vpop.f32.mrf.mxu0 }
  0x9c   :  { %v159_v25 = vpack.c.bf16 %v123_v24, %v123_v24  ;;  %464 = vmatmul.msk.f32.gmra.mxu1 %vm193_vm2, %v123_v24  ;;  %480 = vmatmul.msk.f32.gmra.mxu2 %vm193_vm2, %v123_v24 }
  0x9e   :  { %176 = vst.msk [vmem:[%s832_s4 + $0xc] sm:$0xf] %vm172_vm3, %v159_v25 }
  0xa3   :  { %v126_v26 = vpop.f32.mrf.mxu0 }
  0xa4   :  { %v160_v27 = vpack.c.bf16 %v126_v26, %v126_v26  ;;  %465 = vmatmul.msk.f32.gmra.mxu1 %vm193_vm2, %v126_v26  ;;  %481 = vmatmul.msk.f32.gmra.mxu2 %vm193_vm2, %v126_v26 }
  0xa6   :  { %177 = vst.msk [vmem:[%s832_s4 + $0x10] sm:$0xf] %vm172_vm3, %v160_v27 }
  0xab   :  { %v128_v28 = vpop.f32.mrf.mxu0 }
  0xac   :  { %v161_v29 = vpack.c.bf16 %v128_v28, %v128_v28  ;;  %466 = vmatmul.msk.f32.gmra.mxu1 %vm193_vm2, %v128_v28  ;;  %482 = vmatmul.msk.f32.gmra.mxu2 %vm193_vm2, %v128_v28 }
  0xae   :  { %178 = vst.msk [vmem:[%s832_s4 + $0x14] sm:$0xf] %vm172_vm3, %v161_v29 }
  0xb3   :  { %v131_v30 = vpop.f32.mrf.mxu0 }
  0xb4   :  { %v162_v31 = vpack.c.bf16 %v131_v30, %v131_v30  ;;  %467 = vmatmul.msk.f32.gmra.mxu1 %vm193_vm2, %v131_v30  ;;  %483 = vmatmul.msk.f32.gmra.mxu2 %vm193_vm2, %v131_v30 }
  0xb6   :  { %179 = vst.msk [vmem:[%s832_s4 + $0x18] sm:$0xf] %vm172_vm3, %v162_v31 }
  0xbb   :  { %v133_v32 = vpop.f32.mrf.mxu0 }
  0xbc   :  { %v163_v33 = vpack.c.bf16 %v133_v32, %v133_v32  ;;  %468 = vmatmul.msk.f32.gmra.mxu1 %vm193_vm2, %v133_v32  ;;  %484 = vmatmul.msk.f32.gmra.mxu2 %vm193_vm2, %v133_v32 }
  0xbe   :  { %180 = vst.msk [vmem:[%s832_s4 + $0x1c] sm:$0xf] %vm172_vm3, %v163_v33 }
  0xc3   :  { %v136_v34 = vpop.f32.mrf.mxu0 }
  0xc4   :  { %v164_v35 = vpack.c.bf16 %v136_v34, %v136_v34  ;;  %469 = vmatmul.msk.f32.gmra.mxu1 %vm193_vm2, %v136_v34  ;;  %485 = vmatmul.msk.f32.gmra.mxu2 %vm193_vm2, %v136_v34 }
  0xc6   :  { %181 = vst.msk [vmem:[%s832_s4 + $0x20] sm:$0xf] %vm172_vm3, %v164_v35 }
  0xcb   :  { %v138_v36 = vpop.f32.mrf.mxu0 }
  0xcc   :  { %v165_v38 = vpack.c.bf16 %v138_v36, %v138_v36  ;;  %470 = vmatmul.msk.f32.gmra.mxu1 %vm193_vm2, %v138_v36  ;;  %486 = vmatmul.msk.f32.gmra.mxu2 %vm193_vm2, %v138_v36 }
  0xce   :  { %182 = vst.msk [vmem:[%s832_s4 + $0x24] sm:$0xf] %vm172_vm3, %v165_v38 }
  0xd3   :  { %v141_v40 = vpop.f32.mrf.mxu0 }
  0xd4   :  { %v166_v42 = vpack.c.bf16 %v141_v40, %v141_v40  ;;  %471 = vmatmul.msk.f32.gmra.mxu1 %vm193_vm2, %v141_v40  ;;  %487 = vmatmul.msk.f32.gmra.mxu2 %vm193_vm2, %v141_v40 }
  0xd6   :  { %183 = vst.msk [vmem:[%s832_s4 + $0x28] sm:$0xf] %vm172_vm3, %v166_v42 }
  0xdb   :  { %v143_v44 = vpop.f32.mrf.mxu0 }
  0xdc   :  { %v167_v45 = vpack.c.bf16 %v143_v44, %v143_v44  ;;  %472 = vmatmul.msk.f32.gmra.mxu1 %vm193_vm2, %v143_v44  ;;  %488 = vmatmul.msk.f32.gmra.mxu2 %vm193_vm2, %v143_v44 }
  0xde   :  { %184 = vst.msk [vmem:[%s832_s4 + $0x2c] sm:$0xf] %vm172_vm3, %v167_v45 }
  0xe3   :  { %v146_v46 = vpop.f32.mrf.mxu0 }
  0xe4   :  { %v168_v47 = vpack.c.bf16 %v146_v46, %v146_v46  ;;  %473 = vmatmul.msk.f32.vlgmr.msrb.gmra.mxu3 %vm193_vm2, %v146_v46 }
  0xe6   :  { %185 = vst.msk [vmem:[%s832_s4 + $0x30] sm:$0xf] %vm172_vm3, %v168_v47 }
  0xeb   :  { %v148_v48 = vpop.f32.mrf.mxu0 }
  0xec   :  { %v169_v49 = vpack.c.bf16 %v148_v48, %v148_v48  ;;  %474 = vmatmul.msk.f32.gmra.mxu3 %vm193_vm2, %v148_v48 }
  0xee   :  { %186 = vst.msk [vmem:[%s832_s4 + $0x34] sm:$0xf] %vm172_vm3, %v169_v49 }
  0xf4   :  { %475 = vmatmul.msk.f32.gmra.mxu3 %vm193_vm2, %v151_v37 }
  0xfc   :  { %476 = vmatmul.msk.f32.gmra.mxu3 %vm193_vm2, %v153_v41 }
 0x101   :  { %v259_v50 = vpop.f32.mrf.mxu1 }
 0x102   :  { %308 = vst.msk [vmem:[%s833_s5] sm:$0xff] %vm307_vm4, %v259_v50 }
 0x104   :  { %489 = vmatmul.msk.f32.vlgmr.msra.gmra.mxu3 %vm193_vm2, %v146_v46 }
 0x107   :  { %v345_v51 = vpop.f32.mrf.mxu2 }
 0x108   :  { %393 = vst.msk [vmem:[%s834_s6] sm:$0xff] %vm307_vm4, %v345_v51 }
 0x109   :  { %v262_v52 = vpop.f32.mrf.mxu1 }
 0x10a   :  { %309 = vst.msk [vmem:[%s833_s5 + $0x8] sm:$0xff] %vm307_vm4, %v262_v52 }
 0x10c   :  { %490 = vmatmul.msk.f32.gmra.mxu3 %vm193_vm2, %v148_v48 }
 0x10f   :  { %v348_v53 = vpop.f32.mrf.mxu2 }
 0x110   :  { %394 = vst.msk [vmem:[%s834_s6 + $0x8] sm:$0xff] %vm307_vm4, %v348_v53 }
 0x111   :  { %v265_v54 = vpop.f32.mrf.mxu1 }
 0x112   :  { %310 = vst.msk [vmem:[%s833_s5 + $0x10] sm:$0xff] %vm307_vm4, %v265_v54 }
 0x114   :  { %491 = vmatmul.msk.f32.gmra.mxu3 %vm193_vm2, %v151_v37 }
 0x117   :  { %v351_v55 = vpop.f32.mrf.mxu2 }
 0x118   :  { %395 = vst.msk [vmem:[%s834_s6 + $0x10] sm:$0xff] %vm307_vm4, %v351_v55 }
 0x119   :  { %v268_v56 = vpop.f32.mrf.mxu1 }
 0x11a   :  { %311 = vst.msk [vmem:[%s833_s5 + $0x18] sm:$0xff] %vm307_vm4, %v268_v56 }
 0x11c   :  { %492 = vmatmul.msk.f32.gmra.mxu3 %vm193_vm2, %v153_v41 }
 0x11f   :  { %v354_v57 = vpop.f32.mrf.mxu2 }
 0x120   :  { %396 = vst.msk [vmem:[%s834_s6 + $0x18] sm:$0xff] %vm307_vm4, %v354_v57 }
 0x121   :  { %v271_v58 = vpop.f32.mrf.mxu1 }
 0x122   :  { %312 = vst.msk [vmem:[%s833_s5 + $0x20] sm:$0xff] %vm307_vm4, %v271_v58 }
 0x127   :  { %v357_v59 = vpop.f32.mrf.mxu2 }
 0x128   :  { %397 = vst.msk [vmem:[%s834_s6 + $0x20] sm:$0xff] %vm307_vm4, %v357_v59 }
 0x129   :  { %v274_v60 = vpop.f32.mrf.mxu1 }
 0x12a   :  { %313 = vst.msk [vmem:[%s833_s5 + $0x28] sm:$0xff] %vm307_vm4, %v274_v60 }
 0x12f   :  { %v360_v61 = vpop.f32.mrf.mxu2 }
 0x130   :  { %398 = vst.msk [vmem:[%s834_s6 + $0x28] sm:$0xff] %vm307_vm4, %v360_v61 }
 0x131   :  { %v277_v62 = vpop.f32.mrf.mxu1 }
 0x132   :  { %314 = vst.msk [vmem:[%s833_s5 + $0x30] sm:$0xff] %vm307_vm4, %v277_v62 }
 0x137   :  { %v363_v63 = vpop.f32.mrf.mxu2 }
 0x138   :  { %399 = vst.msk [vmem:[%s834_s6 + $0x30] sm:$0xff] %vm307_vm4, %v363_v63 }
 0x139   :  { %v280_v0 = vpop.f32.mrf.mxu1 }
 0x13a   :  { %315 = vst.msk [vmem:[%s833_s5 + $0x38] sm:$0xff] %vm307_vm4, %v280_v0 }
 0x13f   :  { %v366_v1 = vpop.f32.mrf.mxu2 }
 0x140   :  { %400 = vst.msk [vmem:[%s834_s6 + $0x38] sm:$0xff] %vm307_vm4, %v366_v1 }
 0x141   :  { %v283_v2 = vpop.f32.mrf.mxu1 }
 0x142   :  { %316 = vst.msk [vmem:[%s833_s5 + $0x40] sm:$0xff] %vm307_vm4, %v283_v2 }
 0x147   :  { %v369_v3 = vpop.f32.mrf.mxu2 }
 0x148   :  { %401 = vst.msk [vmem:[%s834_s6 + $0x40] sm:$0xff] %vm307_vm4, %v369_v3 }
 0x149   :  { %v286_v4 = vpop.f32.mrf.mxu1 }
 0x14a   :  { %317 = vst.msk [vmem:[%s833_s5 + $0x48] sm:$0xff] %vm307_vm4, %v286_v4 }
 0x14f   :  { %v372_v5 = vpop.f32.mrf.mxu2 }
 0x150   :  { %402 = vst.msk [vmem:[%s834_s6 + $0x48] sm:$0xff] %vm307_vm4, %v372_v5 }
 0x151   :  { %v289_v6 = vpop.f32.mrf.mxu1 }
 0x152   :  { %318 = vst.msk [vmem:[%s833_s5 + $0x50] sm:$0xff] %vm307_vm4, %v289_v6 }
 0x157   :  { %v375_v7 = vpop.f32.mrf.mxu2 }
 0x158   :  { %403 = vst.msk [vmem:[%s834_s6 + $0x50] sm:$0xff] %vm307_vm4, %v375_v7 }
 0x159   :  { %v292_v8 = vpop.f32.mrf.mxu1 }
 0x15a   :  { %319 = vst.msk [vmem:[%s833_s5 + $0x58] sm:$0xff] %vm307_vm4, %v292_v8 }
 0x15f   :  { %v378_v9 = vpop.f32.mrf.mxu2 }
 0x160   :  { %404 = vst.msk [vmem:[%s834_s6 + $0x58] sm:$0xff] %vm307_vm4, %v378_v9 }
 0x167   :  { %v295_v10 = vpop.f32.mrf.mxu3 }
 0x168   :  { %320 = vst.msk [vmem:[%s833_s5 + $0x60] sm:$0xff] %vm307_vm4, %v295_v10 }
 0x16f   :  { %v298_v11 = vpop.f32.mrf.mxu3 }
 0x170   :  { %321 = vst.msk [vmem:[%s833_s5 + $0x68] sm:$0xff] %vm307_vm4, %v298_v11 }
 0x177   :  { %v301_v12 = vpop.f32.mrf.mxu3 }
 0x178   :  { %322 = vst.msk [vmem:[%s833_s5 + $0x70] sm:$0xff] %vm307_vm4, %v301_v12 }
 0x17f   :  { %v304_v13 = vpop.f32.mrf.mxu3 }
 0x180   :  { %323 = vst.msk [vmem:[%s833_s5 + $0x78] sm:$0xff] %vm307_vm4, %v304_v13 }
 0x187   :  { %v381_v14 = vpop.f32.mrf.mxu3 }
 0x188   :  { %405 = vst.msk [vmem:[%s834_s6 + $0x60] sm:$0xff] %vm307_vm4, %v381_v14 }
 0x18f   :  { %v384_v15 = vpop.f32.mrf.mxu3 }
 0x190   :  { %406 = vst.msk [vmem:[%s834_s6 + $0x68] sm:$0xff] %vm307_vm4, %v384_v15 }
 0x197   :  { %v387_v16 = vpop.f32.mrf.mxu3 }
 0x198   :  { %407 = vst.msk [vmem:[%s834_s6 + $0x70] sm:$0xff] %vm307_vm4, %v387_v16 }
 0x19f   :  { %v390_v17 = vpop.f32.mrf.mxu3 }
 0x1a0   :  { %408 = vst.msk [vmem:[%s834_s6 + $0x78] sm:$0xff] %vm307_vm4, %v390_v17 }

</bundles_post_ra>
